<compile_context>
chip_gen: v7x
topology: tpu7x:2x2x1
jax: 0.10.0
libtpu: 0.0.40
codegen_flags: <defaults>
</compile_context>

<pallas_src>
import functools

import jax
import jax.numpy as jnp
from jax.experimental import pallas as pl
from jax.experimental.pallas import tpu as pltpu

C_IN, C_STEM, C_FAST, C_SLOW, C_NECK, C_DEC = 3, 16, 8, 32, 32, 16
ALPHA = 4  # slow-pathway temporal stride

# Row offsets of the W^T blocks inside the packed weight region (see _pack_params).
_R_STEM = 0
_R_FAST = _R_STEM + C_STEM          # 16
_R_SLOW = _R_FAST + C_FAST          # 24
_R_NECK = _R_SLOW + C_SLOW          # 56
_R_SKIP = _R_NECK + C_NECK          # 88
_R_DEC = _R_SKIP + C_STEM           # 104
_R_OUT = _R_DEC + C_DEC             # 120  (w_out stored as a (C_DEC, 1) column)
_W_ROWS = 144                       # 136 used rows, padded to a multiple of 16
_B_ROWS = 128                       # 121 used bias rows, padded


# ----------------------------------------------------------------------------
# Fused Pallas kernel: one grid step == one batch element, everything in VMEM.
# ----------------------------------------------------------------------------
def _vinet_fused_kernel(x_ref, p_ref, b_ref, o_ref, *, T, HW2):
    # x_ref : (1, C_IN, 4*S) bf16, columns ordered k*S + t*HW2 + p (k = 2x2 window pos)
    # p_ref : (2*S + _W_ROWS, PC) bf16 packed [mix_mean | mix_slow | W^T blocks]
    # b_ref : (_B_ROWS, 1) f32 packed bias column
    # o_ref : (1, 1, HW2) f32 saliency row (lane-dense)
    S = T * HW2
    wbase = 2 * S
    f32 = jnp.float32
    bf16 = jnp.bfloat16

    def w(r0, cout, cin):
        # Static sublane/lane slice of the packed bf16 weight array (W^T block).
        return p_ref[wbase + r0: wbase + r0 + cout, 0:cin]

    def bias(r0, cout):
        # (cout, 1) f32 column, broadcast over the lane (spatial) axis.
        return b_ref[r0:r0 + cout, :]

    def mm(a, b):
        return jnp.dot(a, b, preferred_element_type=f32)

    x = x_ref[0]                                                     # (C_IN, 4*S) bf16

    # ---- stem conv (+ReLU) for all four 2x2-window positions in ONE matmul ----
    y0 = jnp.maximum(mm(w(_R_STEM, C_STEM, C_IN), x) + bias(_R_STEM, C_STEM), 0.0)
    # fused 2x2 spatial average pool: four S-wide, 128-aligned lane slabs
    pooled = (y0[:, 0:S] + y0[:, S:2 * S] + y0[:, 2 * S:3 * S] + y0[:, 3 * S:4 * S]) * 0.25
    pooled_bf = pooled.astype(bf16)                                  # (C_STEM, S) == skip1

    # ---- fast / slow pathways (pointwise convs) over all T frames ----
    fast = jnp.maximum(mm(w(_R_FAST, C_FAST, C_STEM), pooled_bf) + bias(_R_FAST, C_FAST), 0.0)
    slow = jnp.maximum(mm(w(_R_SLOW, C_SLOW, C_STEM), pooled_bf) + bias(_R_SLOW, C_SLOW), 0.0)

    # ---- temporal means as MXU matmuls against packed pooling matrices ----
    # rows [0:S)  of p_ref : 1/T full-temporal mean selector
    # rows [S:2S) of p_ref : 1/n_slow alpha-strided mean selector (slow pathway)
    mix_mean = p_ref[0:S, 0:HW2]                                     # (S, HW2) bf16
    mix_slow = p_ref[S:2 * S, 0:HW2]                                 # (S, HW2) bf16
    pf = jnp.concatenate([pooled, fast], axis=0).astype(bf16)        # (C_STEM+C_FAST, S)
    z = mm(pf, mix_mean)                                             # (24, HW2) f32
    skip_p = z[0:C_STEM, :]                                          # (16, HW2)
    fast_p = z[C_STEM:C_STEM + C_FAST, :]                            # (8, HW2)
    slow_p = mm(slow.astype(bf16), mix_slow)                         # (32, HW2)

    # ---- neck: merged slow|fast fusion + skip projection ----
    neck_in = jnp.concatenate([slow_p, fast_p], axis=0).astype(bf16)     # (40, HW2)
    fused = jnp.maximum(mm(w(_R_NECK, C_NECK, C_SLOW + C_FAST), neck_in)
                        + bias(_R_NECK, C_NECK), 0.0)                    # (32, HW2)
    skip_proc = jnp.maximum(mm(w(_R_SKIP, C_STEM, C_STEM), skip_p.astype(bf16))
                            + bias(_R_SKIP, C_STEM), 0.0)                # (16, HW2)

    # ---- decoder: merged fused|skip conv + sigmoid head (head BEFORE upsample) ----
    dec_in = jnp.concatenate([fused, skip_proc], axis=0).astype(bf16)    # (48, HW2)
    d1 = jnp.maximum(mm(w(_R_DEC, C_DEC, C_NECK + C_STEM), dec_in)
                     + bias(_R_DEC, C_DEC), 0.0)                         # (16, HW2)
    wo = w(_R_OUT, C_DEC, 1).astype(f32)                                 # (16, 1) head column
    logit = jnp.sum(wo * d1, axis=0, keepdims=True) + bias(_R_OUT, 1)    # (1, HW2)
    o_ref[0] = jax.nn.sigmoid(logit).astype(o_ref.dtype)


# ----------------------------------------------------------------------------
# Parameters (deterministic synthetic init; distinct key per layer)
# ----------------------------------------------------------------------------
def init_params(key):
    def lin(k, cin, cout):
        kw, kb = jax.random.split(k)
        scale = 1.0 / jnp.sqrt(jnp.float32(cin))
        w = jax.random.normal(kw, (cin, cout), jnp.float32) * scale
        b = jax.random.normal(kb, (cout,), jnp.float32) * 0.01
        return w, b

    ks = jax.random.split(key, 9)
    p = {}
    p["w_stem"], p["b_stem"] = lin(ks[0], C_IN, C_STEM)        # backbone stem
    p["w_fast"], p["b_fast"] = lin(ks[1], C_STEM, C_FAST)      # fast pathway
    p["w_slow"], p["b_slow"] = lin(ks[2], C_STEM, C_SLOW)      # slow pathway
    p["w_ns"], p["b_neck"] = lin(ks[3], C_SLOW, C_NECK)        # neck: slow branch
    p["w_nf"], _ = lin(ks[4], C_FAST, C_NECK)                  # neck: fast branch
    p["w_skip"], p["b_skip"] = lin(ks[5], C_STEM, C_STEM)      # neck: skip proj
    p["w_d1"], p["b_d1"] = lin(ks[6], C_NECK, C_DEC)           # decoder: fused branch
    p["w_d1s"], _ = lin(ks[7], C_STEM, C_DEC)                  # decoder: skip branch
    p["w_out"], p["b_out"] = lin(ks[8], C_DEC, 1)              # decoder: sigmoid head
    return p


# ----------------------------------------------------------------------------
# Packing: all weights + temporal-pooling matrices -> ONE bf16 array,
#          all biases -> ONE small f32 column  (3 DMA inputs total).
# ----------------------------------------------------------------------------
def _pack_params(params, T, HW2):
    S = T * HW2
    pc = max(48, HW2)                              # widest W^T block needs 48 cols
    n_slow = -(-T // ALPHA)

    eye = jnp.eye(HW2, dtype=jnp.float32)
    mix_mean = jnp.tile(eye, (T, 1)) * (1.0 / T)                          # (S, HW2)
    sel = (jnp.arange(T) % ALPHA == 0).astype(jnp.float32)                # (T,)
    mix_slow = (sel[:, None, None] * eye[None, :, :]).reshape(S, HW2) * (1.0 / n_slow)

    def pad_cols(a):
        return jnp.pad(a, ((0, 0), (0, pc - a.shape[1])))

    # merged concat-equivalent weights: [slow | fast] -> neck, [fused | skip] -> dec
    w_neck = jnp.concatenate([params["w_ns"], params["w_nf"]], axis=0).T  # (32, 40)
    w_dec = jnp.concatenate([params["w_d1"], params["w_d1s"]], axis=0).T  # (16, 48)
    blocks = [
        params["w_stem"].T,     # (16, 3)
        params["w_fast"].T,     # (8, 16)
        params["w_slow"].T,     # (32, 16)
        w_neck,                 # (32, 40)
        params["w_skip"].T,     # (16, 16)
        w_dec,                  # (16, 48)
        params["w_out"],        # (16, 1) -- head kept as a column (sublane-reduce head)
    ]
    wstack = jnp.concatenate([pad_cols(b) for b in blocks], axis=0)       # (136, pc)
    wstack = jnp.pad(wstack, ((0, _W_ROWS - wstack.shape[0]), (0, 0)))    # (144, pc)

    pack = jnp.concatenate([pad_cols(mix_mean), pad_cols(mix_slow), wstack], axis=0)
    pack = pack.astype(jnp.bfloat16)                                      # (2S+144, pc)

    bvec = jnp.concatenate([params["b_stem"], params["b_fast"], params["b_slow"],
                            params["b_neck"], params["b_skip"], params["b_d1"],
                            params["b_out"]])
    bvec = jnp.pad(bvec, (0, _B_ROWS - bvec.shape[0]))
    bvec = bvec.reshape(_B_ROWS, 1).astype(jnp.float32)
    return pack, bvec


# ----------------------------------------------------------------------------
# Forward pass (mirrors ViNet_A.forward with use_skip=True, neck_name='neck')
# ----------------------------------------------------------------------------
def vinet_a_forward(x, params, mask=None):
    # x: (B, C, T, H, W) -- PyTorch NCTHW.  H, W must be even.
    # TODO(synk): mask / temp_sal inputs of the original module are ignored.
    B, C, T, H, W = x.shape
    assert C == C_IN and H % 2 == 0 and W % 2 == 0
    H2, W2 = H // 2, W // 2
    HW2 = H2 * W2
    S = T * HW2

    # Channel-major, lane-dense layout: (B, C_IN, 4*S) with column index
    # k*S + t*HW2 + (h2*W2 + w2); k indexes the 2x2 stem-pool window position so
    # the pool becomes a sum of four 128-aligned lane slabs inside the kernel.
    xl = x.reshape(B, C, T, H2, 2, W2, 2)
    xl = jnp.transpose(xl, (0, 1, 4, 6, 2, 3, 5))          # (B, C, ky, kx, T, H2, W2)
    x_perm = xl.reshape(B, C, 4 * S).astype(jnp.bfloat16)

    pack, bvec = _pack_params(params, T, HW2)

    sal_small = pl.pallas_call(
        functools.partial(_vinet_fused_kernel, T=T, HW2=HW2),
        out_shape=jax.ShapeDtypeStruct((B, 1, HW2), jnp.float32),
        grid=(B,),
        in_specs=[
            pl.BlockSpec((1, C, 4 * S), lambda b: (b, 0, 0)),
            pl.BlockSpec(pack.shape, lambda b: (0, 0)),     # constant block: fetched once
            pl.BlockSpec(bvec.shape, lambda b: (0, 0)),
        ],
        out_specs=pl.BlockSpec((1, 1, HW2), lambda b: (b, 0, 0)),
        compiler_params=pltpu.CompilerParams(
            dimension_semantics=("parallel",),
            vmem_limit_bytes=32 * 1024 * 1024),
    )(x_perm, pack, bvec)

    # nearest x2 upsample of the 1-channel saliency map (pointwise sigmoid head
    # commutes with nearest repeat, so it was already applied in-kernel).
    sal = sal_small.reshape(B, H2, W2)
    sal = jnp.repeat(jnp.repeat(sal, 2, axis=1), 2, axis=2)    # (B, H, W)
    return sal[:, None, :, :]                                  # (B, 1, H, W)


# ----------------------------------------------------------------------------
if __name__ == "__main__":
    key = jax.random.PRNGKey(0)
    kx, kp = jax.random.split(key)
    B, C, T, H, W = 2, 3, 8, 16, 16
    x = jax.random.normal(kx, (B, C, T, H, W), jnp.float32)
    params = init_params(kp)

    out = jax.jit(vinet_a_forward)(x, params)
    out = jax.block_until_ready(out)

    assert out.shape == (B, 1, H, W), out.shape
    assert bool(jnp.all(jnp.isfinite(out)))
    assert bool(jnp.all((out >= 0.0) & (out <= 1.0)))  # sigmoid head
    print("KERNEL_OK")
</pallas_src>

<mosaic_0001>
module attributes {stable_mosaic.version = 11 : i64} {
  func.func @_vinet_fused_kernel(%arg0: i32, %arg1: memref<1x3x2048xbf16, #tpu.memory_space<vmem>>, %arg2: memref<1168x64xbf16, #tpu.memory_space<vmem>>, %arg3: memref<128x1xf32, #tpu.memory_space<vmem>>, %arg4: memref<1x1x64xf32, #tpu.memory_space<vmem>>) attributes {dimension_semantics = [#tpu.dimension_semantics<parallel>], iteration_bounds = array<i64: 2>, scalar_prefetch = 0 : i64, scratch_operands = 0 : i64, tpu.core_type = #tpu.core_type<tc>, window_params = [{transform_indices = @transform_0, window_bounds = array<i64: 1, 3, 2048>}, {pipeline_mode = #tpu.pipeline_mode<synchronous>, transform_indices = @transform_1, window_bounds = array<i64: 1168, 64>}, {pipeline_mode = #tpu.pipeline_mode<synchronous>, transform_indices = @transform_2, window_bounds = array<i64: 128, 1>}, {transform_indices = @transform_3, window_bounds = array<i64: 1, 1, 64>}]} {
    %c0 = arith.constant 0 : index
    %c0_0 = arith.constant 0 : index
    %c0_1 = arith.constant 0 : index
    %0 = vector.load %arg1[%c0, %c0_0, %c0_1] : memref<1x3x2048xbf16, #tpu.memory_space<vmem>>, vector<1x3x2048xbf16>
    %1 = vector.shape_cast %0 : vector<1x3x2048xbf16> to vector<3x2048xbf16>
    %c1024 = arith.constant 1024 : index
    %c0_2 = arith.constant 0 : index
    %2 = vector.load %arg2[%c1024, %c0_2] : memref<1168x64xbf16, #tpu.memory_space<vmem>>, vector<16x3xbf16>
    %cst = arith.constant dense<0.000000e+00> : vector<16x2048xf32>
    %3 = tpu.matmul %2, %1, %cst {dimension_numbers = #tpu.dot_dimension_numbers<[1], [0], [0], [1], [0, 0, 1, 1], [], []>} : vector<16x3xbf16>, vector<3x2048xbf16>, vector<16x2048xf32> -> vector<16x2048xf32>
    %c0_3 = arith.constant 0 : index
    %c0_4 = arith.constant 0 : index
    %4 = vector.load %arg3[%c0_3, %c0_4] : memref<128x1xf32, #tpu.memory_space<vmem>>, vector<16x1xf32>
    %5 = vector.broadcast %4 : vector<16x1xf32> to vector<16x2048xf32>
    %6 = arith.addf %3, %5 : vector<16x2048xf32>
    %cst_5 = arith.constant 0.000000e+00 : f32
    %7 = vector.broadcast %cst_5 : f32 to vector<16x2048xf32>
    %8 = arith.maximumf %6, %7 : vector<16x2048xf32>
    %9 = vector.extract_strided_slice %8 {offsets = [0, 0], sizes = [16, 512], strides = [1, 1]} : vector<16x2048xf32> to vector<16x512xf32>
    %10 = vector.extract_strided_slice %8 {offsets = [0, 512], sizes = [16, 512], strides = [1, 1]} : vector<16x2048xf32> to vector<16x512xf32>
    %11 = arith.addf %9, %10 : vector<16x512xf32>
    %12 = vector.extract_strided_slice %8 {offsets = [0, 1024], sizes = [16, 512], strides = [1, 1]} : vector<16x2048xf32> to vector<16x512xf32>
    %13 = arith.addf %11, %12 : vector<16x512xf32>
    %14 = vector.extract_strided_slice %8 {offsets = [0, 1536], sizes = [16, 512], strides = [1, 1]} : vector<16x2048xf32> to vector<16x512xf32>
    %15 = arith.addf %13, %14 : vector<16x512xf32>
    %cst_6 = arith.constant 2.500000e-01 : f32
    %16 = vector.broadcast %cst_6 : f32 to vector<16x512xf32>
    %17 = arith.mulf %15, %16 : vector<16x512xf32>
    %18 = arith.truncf %17 : vector<16x512xf32> to vector<16x512xbf16>
    %c1040 = arith.constant 1040 : index
    %c0_7 = arith.constant 0 : index
    %19 = vector.load %arg2[%c1040, %c0_7] : memref<1168x64xbf16, #tpu.memory_space<vmem>>, vector<8x16xbf16>
    %cst_8 = arith.constant dense<0.000000e+00> : vector<8x512xf32>
    %20 = tpu.matmul %19, %18, %cst_8 {dimension_numbers = #tpu.dot_dimension_numbers<[1], [0], [0], [1], [0, 0, 1, 1], [], []>} : vector<8x16xbf16>, vector<16x512xbf16>, vector<8x512xf32> -> vector<8x512xf32>
    %c16 = arith.constant 16 : index
    %c0_9 = arith.constant 0 : index
    %21 = vector.load %arg3[%c16, %c0_9] : memref<128x1xf32, #tpu.memory_space<vmem>>, vector<8x1xf32>
    %22 = vector.broadcast %21 : vector<8x1xf32> to vector<8x512xf32>
    %23 = arith.addf %20, %22 : vector<8x512xf32>
    %cst_10 = arith.constant 0.000000e+00 : f32
    %24 = vector.broadcast %cst_10 : f32 to vector<8x512xf32>
    %25 = arith.maximumf %23, %24 : vector<8x512xf32>
    %c1048 = arith.constant 1048 : index
    %c0_11 = arith.constant 0 : index
    %26 = vector.load %arg2[%c1048, %c0_11] : memref<1168x64xbf16, #tpu.memory_space<vmem>>, vector<32x16xbf16>
    %cst_12 = arith.constant dense<0.000000e+00> : vector<32x512xf32>
    %27 = tpu.matmul %26, %18, %cst_12 {dimension_numbers = #tpu.dot_dimension_numbers<[1], [0], [0], [1], [0, 0, 1, 1], [], []>} : vector<32x16xbf16>, vector<16x512xbf16>, vector<32x512xf32> -> vector<32x512xf32>
    %c24 = arith.constant 24 : index
    %c0_13 = arith.constant 0 : index
    %28 = vector.load %arg3[%c24, %c0_13] : memref<128x1xf32, #tpu.memory_space<vmem>>, vector<32x1xf32>
    %29 = vector.broadcast %28 : vector<32x1xf32> to vector<32x512xf32>
    %30 = arith.addf %27, %29 : vector<32x512xf32>
    %cst_14 = arith.constant 0.000000e+00 : f32
    %31 = vector.broadcast %cst_14 : f32 to vector<32x512xf32>
    %32 = arith.maximumf %30, %31 : vector<32x512xf32>
    %c0_15 = arith.constant 0 : index
    %c0_16 = arith.constant 0 : index
    %33 = vector.load %arg2[%c0_15, %c0_16] : memref<1168x64xbf16, #tpu.memory_space<vmem>>, vector<512x64xbf16>
    %c512 = arith.constant 512 : index
    %c0_17 = arith.constant 0 : index
    %34 = vector.load %arg2[%c512, %c0_17] : memref<1168x64xbf16, #tpu.memory_space<vmem>>, vector<512x64xbf16>
    %35 = tpu.concatenate %17, %25 in 0 : vector<16x512xf32>, vector<8x512xf32> -> vector<24x512xf32>
    %36 = arith.truncf %35 : vector<24x512xf32> to vector<24x512xbf16>
    %cst_18 = arith.constant dense<0.000000e+00> : vector<24x64xf32>
    %37 = tpu.matmul %36, %33, %cst_18 {dimension_numbers = #tpu.dot_dimension_numbers<[1], [0], [0], [1], [0, 0, 1, 1], [], []>} : vector<24x512xbf16>, vector<512x64xbf16>, vector<24x64xf32> -> vector<24x64xf32>
    %38 = vector.extract_strided_slice %37 {offsets = [0, 0], sizes = [16, 64], strides = [1, 1]} : vector<24x64xf32> to vector<16x64xf32>
    %39 = vector.extract_strided_slice %37 {offsets = [16, 0], sizes = [8, 64], strides = [1, 1]} : vector<24x64xf32> to vector<8x64xf32>
    %40 = arith.truncf %32 : vector<32x512xf32> to vector<32x512xbf16>
    %cst_19 = arith.constant dense<0.000000e+00> : vector<32x64xf32>
    %41 = tpu.matmul %40, %34, %cst_19 {dimension_numbers = #tpu.dot_dimension_numbers<[1], [0], [0], [1], [0, 0, 1, 1], [], []>} : vector<32x512xbf16>, vector<512x64xbf16>, vector<32x64xf32> -> vector<32x64xf32>
    %42 = tpu.concatenate %41, %39 in 0 : vector<32x64xf32>, vector<8x64xf32> -> vector<40x64xf32>
    %43 = arith.truncf %42 : vector<40x64xf32> to vector<40x64xbf16>
    %c1080 = arith.constant 1080 : index
    %c0_20 = arith.constant 0 : index
    %44 = vector.load %arg2[%c1080, %c0_20] : memref<1168x64xbf16, #tpu.memory_space<vmem>>, vector<32x40xbf16>
    %cst_21 = arith.constant dense<0.000000e+00> : vector<32x64xf32>
    %45 = tpu.matmul %44, %43, %cst_21 {dimension_numbers = #tpu.dot_dimension_numbers<[1], [0], [0], [1], [0, 0, 1, 1], [], []>} : vector<32x40xbf16>, vector<40x64xbf16>, vector<32x64xf32> -> vector<32x64xf32>
    %c56 = arith.constant 56 : index
    %c0_22 = arith.constant 0 : index
    %46 = vector.load %arg3[%c56, %c0_22] : memref<128x1xf32, #tpu.memory_space<vmem>>, vector<32x1xf32>
    %47 = vector.broadcast %46 : vector<32x1xf32> to vector<32x64xf32>
    %48 = arith.addf %45, %47 : vector<32x64xf32>
    %cst_23 = arith.constant 0.000000e+00 : f32
    %49 = vector.broadcast %cst_23 : f32 to vector<32x64xf32>
    %50 = arith.maximumf %48, %49 : vector<32x64xf32>
    %c1112 = arith.constant 1112 : index
    %c0_24 = arith.constant 0 : index
    %51 = vector.load %arg2[%c1112, %c0_24] : memref<1168x64xbf16, #tpu.memory_space<vmem>>, vector<16x16xbf16>
    %52 = arith.truncf %38 : vector<16x64xf32> to vector<16x64xbf16>
    %cst_25 = arith.constant dense<0.000000e+00> : vector<16x64xf32>
    %53 = tpu.matmul %51, %52, %cst_25 {dimension_numbers = #tpu.dot_dimension_numbers<[1], [0], [0], [1], [0, 0, 1, 1], [], []>} : vector<16x16xbf16>, vector<16x64xbf16>, vector<16x64xf32> -> vector<16x64xf32>
    %c88 = arith.constant 88 : index
    %c0_26 = arith.constant 0 : index
    %54 = vector.load %arg3[%c88, %c0_26] : memref<128x1xf32, #tpu.memory_space<vmem>>, vector<16x1xf32>
    %55 = vector.broadcast %54 : vector<16x1xf32> to vector<16x64xf32>
    %56 = arith.addf %53, %55 : vector<16x64xf32>
    %cst_27 = arith.constant 0.000000e+00 : f32
    %57 = vector.broadcast %cst_27 : f32 to vector<16x64xf32>
    %58 = arith.maximumf %56, %57 : vector<16x64xf32>
    %59 = tpu.concatenate %50, %58 in 0 : vector<32x64xf32>, vector<16x64xf32> -> vector<48x64xf32>
    %60 = arith.truncf %59 : vector<48x64xf32> to vector<48x64xbf16>
    %c1128 = arith.constant 1128 : index
    %c0_28 = arith.constant 0 : index
    %61 = vector.load %arg2[%c1128, %c0_28] : memref<1168x64xbf16, #tpu.memory_space<vmem>>, vector<16x48xbf16>
    %cst_29 = arith.constant dense<0.000000e+00> : vector<16x64xf32>
    %62 = tpu.matmul %61, %60, %cst_29 {dimension_numbers = #tpu.dot_dimension_numbers<[1], [0], [0], [1], [0, 0, 1, 1], [], []>} : vector<16x48xbf16>, vector<48x64xbf16>, vector<16x64xf32> -> vector<16x64xf32>
    %c104 = arith.constant 104 : index
    %c0_30 = arith.constant 0 : index
    %63 = vector.load %arg3[%c104, %c0_30] : memref<128x1xf32, #tpu.memory_space<vmem>>, vector<16x1xf32>
    %64 = vector.broadcast %63 : vector<16x1xf32> to vector<16x64xf32>
    %65 = arith.addf %62, %64 : vector<16x64xf32>
    %cst_31 = arith.constant 0.000000e+00 : f32
    %66 = vector.broadcast %cst_31 : f32 to vector<16x64xf32>
    %67 = arith.maximumf %65, %66 : vector<16x64xf32>
    %c1144 = arith.constant 1144 : index
    %c0_32 = arith.constant 0 : index
    %68 = vector.load %arg2[%c1144, %c0_32] : memref<1168x64xbf16, #tpu.memory_space<vmem>>, vector<16x1xbf16>
    %69 = arith.extf %68 : vector<16x1xbf16> to vector<16x1xf32>
    %70 = vector.broadcast %69 : vector<16x1xf32> to vector<16x64xf32>
    %71 = arith.mulf %70, %67 : vector<16x64xf32>
    %cst_33 = arith.constant dense<0.000000e+00> : vector<64xf32>
    %72 = vector.multi_reduction <add>, %71, %cst_33 [0] : vector<16x64xf32> to vector<64xf32>
    %73 = vector.shape_cast %72 : vector<64xf32> to vector<1x64xf32>
    %c120 = arith.constant 120 : index
    %c0_34 = arith.constant 0 : index
    %74 = vector.load %arg3[%c120, %c0_34] : memref<128x1xf32, #tpu.memory_space<vmem>>, vector<1x1xf32>
    %75 = vector.broadcast %74 : vector<1x1xf32> to vector<1x64xf32>
    %76 = arith.addf %73, %75 : vector<1x64xf32>
    %77 = arith.negf %76 : vector<1x64xf32>
    %78 = math.exp %77 : vector<1x64xf32>
    %cst_35 = arith.constant 1.000000e+00 : f32
    %79 = vector.broadcast %cst_35 : f32 to vector<1x64xf32>
    %80 = arith.addf %79, %78 : vector<1x64xf32>
    %81 = arith.divf %79, %80 : vector<1x64xf32>
    %c0_36 = arith.constant 0 : index
    %c0_37 = arith.constant 0 : index
    %c0_38 = arith.constant 0 : index
    %82 = vector.load %arg4[%c0_36, %c0_37, %c0_38] : memref<1x1x64xf32, #tpu.memory_space<vmem>>, vector<1x1x64xf32>
    %83 = vector.shape_cast %82 : vector<1x1x64xf32> to vector<1x64xf32>
    %84 = vector.shape_cast %81 : vector<1x64xf32> to vector<1x1x64xf32>
    tpu.vector_store %arg4[%c0_36, %c0_37, %c0_38], %84 {strides = array<i32>} : memref<1x1x64xf32, #tpu.memory_space<vmem>>, vector<1x1x64xf32>,
    return
  }
  func.func @transform_0(%arg0: i32) -> (i32, i32, i32) {
    %c0_i32 = arith.constant 0 : i32
    %c0_i32_0 = arith.constant 0 : i32
    %c0_i32_1 = arith.constant 0 : i32
    return %arg0, %c0_i32, %c0_i32_0 : i32, i32, i32
  }
  func.func @transform_1(%arg0: i32) -> (i32, i32) {
    %c0_i32 = arith.constant 0 : i32
    %c0_i32_0 = arith.constant 0 : i32
    %c0_i32_1 = arith.constant 0 : i32
    return %c0_i32, %c0_i32_0 : i32, i32
  }
  func.func @transform_2(%arg0: i32) -> (i32, i32) {
    %c0_i32 = arith.constant 0 : i32
    %c0_i32_0 = arith.constant 0 : i32
    %c0_i32_1 = arith.constant 0 : i32
    return %c0_i32, %c0_i32_0 : i32, i32
  }
  func.func @transform_3(%arg0: i32) -> (i32, i32, i32) {
    %c0_i32 = arith.constant 0 : i32
    %c0_i32_0 = arith.constant 0 : i32
    %c0_i32_1 = arith.constant 0 : i32
    return %arg0, %c0_i32, %c0_i32_0 : i32, i32, i32
  }
}

</mosaic_0001>

<bundles_post_ra>
// kernel: vinet_a_forward.1
= control target key start
LH: loop header
LB: loop body
LE: loop exit
PB: predicated region body
PF: predicated region fallthrough
CT: control target
= control target key end

     0   :  { %s2422_s12 = smov 0   ;;  %s2825_s0 = inlined_call_operand.vmem [shape: bf16[2,3,2048], index: 0, kind: input, shape index: {}]   ;;  %s2826_s1 = inlined_call_operand.vmem [shape: bf16[1168,64], index: 1, kind: input, shape index: {}]   ;;  %s2827_s2 = inlined_call_operand.vmem [shape: f32[128,1], index: 2, kind: input, shape index: {}]   ;;  %s2828_s3 = inlined_call_operand.vmem [shape: f32[2,1,64], index: 3, kind: output, shape index: {}]  }
   0x1 LB: > { %s2040_s13 = sadd.s32 4294967295, %s2395_s12   ;;  %p2044_p0 = scmp.ge.s32.totalorder %s2395_s12, 1  ;;  %s2395_s12 = sphi %s2422_s12, %s13_s12  }
   0x2   : > { %p137_p1 = scmp.lt.s32.totalorder %s2395_s12, 3 }
   0x4   : > { %p138_p2 = pnand %p2044_p0, %p137_p1 }
   0x5   : > { %p159_p3 = scmp.lt.s32.totalorder (!%p138_p2), %s2040_s13, 1  ;;  %v199_v0 = vlaneseq (!%p138_p2)  ;;  %vm267_vm0 = vcmask (!%p138_p2), 1040384   ;;  %v2397_v1 = vmov (!%p138_p2), 1983009808   ;;  %v2398_v4 = vmov (!%p138_p2), 0   ;;  %v174_v5 = vld [vmem:[%s2827_s2] sm:$0xff] (!%p138_p2) }
   0x6   : > { %141 = sbr.rel (%p138_p2) target bundleno = 1251 (0x4e3), region = 32  ;;  %v197_v2 = vunpack.c.l.s4 (!%p138_p2), %v2397_v1  ;;  %351 = vmatprep.mubr.bf16.mxu1 (!%p138_p2), %v2398_v4  ;;  %437 = vmatprep.mubr.bf16.mxu0 (!%p138_p2), %v2398_v4  ;;  %vm268_vm1 = vcmask (!%p138_p2), 1041408   ;;  %v2399_v7 = vmov (!%p138_p2), 65535   ;;  %v175_v10 = vld [vmem:[%s2827_s2 + $0x8] sm:$0xff] (!%p138_p2)  ;;  %vm263_vm2 = vcmask (!%p138_p2), 23552   ;;  %v833_v20 = vld [vmem:[%s2827_s2 + $0x20] sm:$0xff] (!%p138_p2) }
   0x7   : > { %v200_v3 = vshrl.u32 (!%p138_p2), %v199_v0, 7  ;;  %v269_v8 = vsel (!%p138_p2), %vm267_vm0, 4294967295, %v2399_v7  ;;  %2303 = vset.pattern.permute.xlu0 (!%p138_p2), %v2398_v4  ;;  %2304 = vset.pattern.permute.xlu1 (!%p138_p2), %v2398_v4  ;;  %v2458_v32 = vld [vmem:[%s2826_s1 + $0x200] sm:$0xff] (!%p138_p2)   ;;  %v835_v34 = vld [vmem:[%s2827_s2 + $0x30] sm:$0xff] (!%p138_p2)  ;;  %v1978_v58 = vld [vmem:[%s2827_s2 + $0x78] sm:$0x1] (!%p138_p2) }
   0x8   : > { %v198_v6 = vunpack.c.0.s8 (!%p138_p2), %v197_v2  ;;  %178 = vperm.xlu0 (!%p138_p2), %2303, %v174_v5   ;;  %v2446_v12 = vsel (!%p138_p2), %vm268_vm1, %v269_v8, 0  ;;  %v1720_v45 = vld [vmem:[%s2827_s2 + $0x40] sm:$0xff] (!%p138_p2)  ;;  %v1722_v51 = vld [vmem:[%s2827_s2 + $0x50] sm:$0xff] (!%p138_p2)  ;;  %v832_v61 = vld [vmem:[%s2827_s2 + $0x18] sm:$0xff] (!%p138_p2)  ;;  %vm738_vm3 = vcmask (!%p138_p2), 130048   ;;  %vm2401_vm4 = vmmov (!%p138_p2), 0  }
   0x9   : > { %v1821_v54 = vld [vmem:[%s2827_s2 + $0x60] sm:$0xff] (!%p138_p2)  ;;  %v1889_v57 = vld [vmem:[%s2827_s2 + $0x70] sm:$0xff] (!%p138_p2)  ;;  %v834_v62 = vld [vmem:[%s2827_s2 + $0x28] sm:$0xff] (!%p138_p2)  ;;  %vm1753_vm5 = vcmask (!%p138_p2), 326656   ;;  %vm1760_vm6 = vcmask (!%p138_p2), 1043456   ;;  %vm1905_vm7 = vcmask (!%p138_p2), 392192  }
   0xa   : > { %v201_v9 = vsub.s32 (!%p138_p2), %v198_v6, %v200_v3  ;;  %v732_v60 = vld [vmem:[%s2827_s2 + $0x10] sm:$0xff] (!%p138_p2)  ;;  %v1719_v63 = vld [vmem:[%s2827_s2 + $0x38] sm:$0xff] (!%p138_p2)  ;;  %v1721_v0 = vld [vmem:[%s2827_s2 + $0x48] sm:$0xff] (!%p138_p2)  ;;  %vm1968_vm8 = vcmask (!%p138_p2), 523264   ;;  %vm1991_vm9 = vcmask (!%p138_p2), 516096  }
   0xb   : > { %735 = vperm.xlu1 (!%p138_p2), %2304, %v732_v60   ;;  %v1820_v1 = vld [vmem:[%s2827_s2 + $0x58] sm:$0xff] (!%p138_p2)  ;;  %v1888_v6 = vld [vmem:[%s2827_s2 + $0x68] sm:$0xff] (!%p138_p2) }
   0xc   : > { %183 = vperm.xlu0 (!%p138_p2), %2303, %v175_v10   ;;  %v1952_v2 = vld [vmem:[%s2826_s1 + $0x23c] sm:$0xff] (!%p138_p2)  }
   0xd   : > { %s2830_s13 = smov (!%p159_p3, %s2040_s13), 1  ;;  %v1954_v3 = vunpack.c.l.bf16 %v1952_v2  ;;  %v1955_v5 = vunpack.c.h.bf16 %v1952_v2 }
   0xe   : > { %s2139_s16 = sshll.u32 %s2830_s13, 5  ;;  %s166_s23 = scalar_lea.vmem %s2828_s3, %s2830_s13 }
   0xf   : > { %s163_s19 = scalar_lea.vmem %s2825_s0, %s2139_s16  ;;  %838 = vperm.xlu1 %2304, %v832_v61   ;;  %v2305_v7 = vpack.i.bf16 %v1955_v5, %v1954_v3 }
  0x10   : > { %v168_v11 = vld [vmem:[%s163_s19] sm:$0xff]  ;;  %v169_v13 = vld [vmem:[%s163_s19 + $0x8] sm:$0xff]  ;;  %v170_v14 = vld [vmem:[%s163_s19 + $0x10] sm:$0xff]  ;;  %843 = vperm.xlu0 %2303, %v833_v20  }
  0x11   : > { %v195_v15 = vcombine.high %v168_v11, %v168_v11  ;;  %v202_v16 = vrot.slane %v168_v11, %v201_v9  ;;  %v212_v17 = vcombine.high %v169_v13, %v169_v13  ;;  %v219_v18 = vrot.slane %v169_v13, %v201_v9  ;;  %v171_v19 = vld [vmem:[%s163_s19 + $0x18] sm:$0xff] }
  0x12   : > { %v236_v21 = vrot.slane %v170_v14, %v201_v9  ;;  %v253_v22 = vrot.slane %v171_v19, %v201_v9  ;;  %v229_v33 = vcombine.high %v170_v14, %v170_v14  ;;  %v246_v46 = vcombine.high %v171_v19, %v171_v19 }
  0x13   : > { %v210_v23 = vcombine.high %v202_v16, %v202_v16  ;;  %v227_v24 = vcombine.high %v219_v18, %v219_v18  ;;  %v272_v25 = vand.u32 %v2446_v12, %v202_v16  ;;  %v284_v26 = vand.u32 %v2446_v12, %v219_v18  ;;  %848 = vperm.xlu1 %2304, %v834_v62  }
  0x14   : > { %v209_v27 = vrot.slane %v195_v15, %v201_v9  ;;  %v244_v28 = vcombine.high %v236_v21, %v236_v21  ;;  %v226_v29 = vrot.slane %v212_v17, %v201_v9  ;;  %v261_v38 = vcombine.high %v253_v22, %v253_v22  ;;  %853 = vperm.xlu0 %2303, %v835_v34  }
  0x15   : > { %v275_v30 = vand.u32 %v2446_v12, %v210_v23  ;;  %v287_v31 = vand.u32 %v2446_v12, %v227_v24  ;;  %v296_v41 = vand.u32 %v2446_v12, %v236_v21  ;;  %v243_v44 = vrot.slane %v229_v33, %v201_v9 }
  0x16   : > { %v211_v35 = vcombine.high %v209_v27, %v209_v27  ;;  %v299_v36 = vand.u32 %v2446_v12, %v244_v28  ;;  %v228_v37 = vcombine.high %v226_v29, %v226_v29  ;;  %v278_v40 = vand.u32 %v2446_v12, %v209_v27 }
  0x17   : > { %319 = vmatprep.subr.bf16.mxu1 %v275_v30  ;;  %405 = vmatprep.subr.bf16.mxu0 %v287_v31  ;;  %v311_v43 = vand.u32 %v2446_v12, %v261_v38  ;;  %v245_v47 = vcombine.high %v243_v44, %v243_v44  ;;  %v290_v48 = vand.u32 %v2446_v12, %v226_v29 }
  0x18   : > { %320 = vmatpush1.bf16.msra.mxu1 %v272_v25  ;;  %406 = vmatpush1.bf16.msra.mxu0 %v284_v26  ;;  %v281_v39 = vand.u32 %v2446_v12, %v211_v35  ;;  %v293_v42 = vand.u32 %v2446_v12, %v228_v37  ;;  %v308_v49 = vand.u32 %v2446_v12, %v253_v22 }
  0x19   : > { %491 = vmatprep.subr.bf16.mxu0 %v299_v36  ;;  %1730 = vperm.xlu0 %2303, %v1720_v45   ;;  %v260_v50 = vrot.slane %v246_v46, %v201_v9  ;;  %v305_v52 = vand.u32 %v2446_v12, %v245_v47  ;;  %v302_v55 = vand.u32 %v2446_v12, %v243_v44 }
  0x1a   : > { %362 = vmatprep.subr.bf16.mxu1 %v281_v39  ;;  %1725 = vperm.xlu1 %2304, %v1719_v63  }
  0x1b   : > { %2048 = vmatmul.mubr.msk.bf16.vlgmr.msra.gmra.mrb[0].mxu1 %vm263_vm2, %v2458_v32  ;;  %2050 = vmatmul.mubr.msk.bf16.vlgmr.msra.gmra.mrb[0].mxu0 %vm263_vm2, %v2458_v32  ;;  %v262_v53 = vcombine.high %v260_v50, %v260_v50  ;;  %v314_v59 = vand.u32 %v2446_v12, %v260_v50 }
  0x1c   : > { %363 = vmatpush1.bf16.msra.mxu1 %v278_v40  ;;  %492 = vmatpush1.bf16.msra.mxu0 %v296_v41 }
  0x1d   : > { %394 = vmatprep.mubr.bf16.mxu1 %v2398_v4  ;;  %523 = vmatprep.mubr.bf16.mxu0 %v2398_v4  ;;  %v317_v56 = vand.u32 %v2446_v12, %v262_v53 }
  0x1e   : > { %448 = vmatprep.subr.bf16.mxu1 %v293_v42  ;;  %577 = vmatprep.subr.bf16.mxu0 %v311_v43 }
  0x1f   : > { %1740 = vperm.xlu0 %2303, %v1722_v51   ;;  %1735 = vperm.xlu1 %2304, %v1721_v0  }
  0x23   : > { %2049 = vmatmul.mubr.msk.bf16.vlgmr.msra.gmra.mrb[4].mxu1 %vm263_vm2, %v2458_v32  ;;  %2052 = vmatmul.mubr.msk.bf16.vlgmr.msra.gmra.mrb[4].mxu0 %vm263_vm2, %v2458_v32 }
  0x24   : > { %449 = vmatpush1.bf16.msra.mxu1 %v290_v48  ;;  %578 = vmatpush1.bf16.msra.mxu0 %v308_v49 }
  0x25   : > { %480 = vmatprep.mubr.bf16.mxu1 %v2398_v4  ;;  %609 = vmatprep.mubr.bf16.mxu0 %v2398_v4 }
  0x26   : > { %534 = vmatprep.subr.bf16.mxu1 %v305_v52  ;;  %1829 = vperm.xlu0 %2303, %v1821_v54  }
  0x27   : > { %1824 = vperm.xlu1 %2304, %v1820_v1  }
  0x2a   : > { %1897 = vperm.xlu0 %2303, %v1889_v57  }
  0x2b   : > { %2051 = vmatmul.mubr.msk.bf16.vlgmr.msra.gmra.mrb[8].mxu1 %vm263_vm2, %v2458_v32  ;;  %2054 = vmatmul.mubr.msk.bf16.vlgmr.msra.gmra.mrb[8].mxu0 %vm263_vm2, %v2458_v32 }
  0x2c   : > { %535 = vmatpush1.bf16.msra.mxu1 %v302_v55  ;;  %566 = vmatprep.mubr.bf16.mxu1 %v2398_v4 }
  0x2d   : > { %620 = vmatprep.subr.bf16.mxu1 %v317_v56  ;;  %774 = vmatprep.mubr.bf16.mxu0 %v2398_v4 }
  0x2e   : > { %1981 = vperm.xlu0 %2303, %v1978_v58   ;;  %1892 = vperm.xlu1 %2304, %v1888_v6  }
  0x32   : > { %2306 = vperm.xlu1 %2304, %v2305_v7  }
  0x33   : > { %2053 = vmatmul.mubr.msk.bf16.vlgmr.msra.gmra.mrb[12].mxu1 %vm263_vm2, %v2458_v32 }
  0x34   : > { %621 = vmatpush1.bf16.msra.mxu1 %v314_v59  ;;  %652 = vmatprep.mubr.bf16.mxu1 %v2398_v4 }
  0x3b   : > { %2055 = vmatmul.mubr.msk.bf16.vlgmr.msra.gmra.mrb[16].mxu1 %vm263_vm2, %v2458_v32 }
  0x3c   : > { %815 = vmatprep.mubr.bf16.mxu1 %v2398_v4 }
  0x87   : > { %v2538_v8 = vpop.permute.xlu0 %178 }
  0x8b   : > { %v2540_v9 = vpop.permute.xlu0 %183 }
  0xee   : > { %v353_v10 = vpop.f32.mrb[0].mxu1  ;;  %v439_v11 = vpop.f32.mrb[0].mxu0 }
  0xef   : > { %v354_v12 = vadd.f32 %v353_v10, %v2538_v8  ;;  %v440_v13 = vadd.f32 %v439_v11, %v2538_v8  ;;  %v355_v14 = vpop.f32.mrb[1].mxu1  ;;  %v441_v15 = vpop.f32.mrb[1].mxu0 }
  0xf0   : > { %v356_v16 = vadd.f32 %v355_v14, %v2538_v8  ;;  %v442_v17 = vadd.f32 %v441_v15, %v2538_v8  ;;  %v357_v18 = vpop.f32.mrb[2].mxu1  ;;  %v443_v19 = vpop.f32.mrb[2].mxu0 }
  0xf1   : > { %v663_v20 = vmax.f32 %v354_v12, 0.0  ;;  %v667_v21 = vmax.f32 %v440_v13, 0.0  ;;  %v358_v22 = vadd.f32 %v357_v18, %v2540_v9  ;;  %v444_v23 = vadd.f32 %v443_v19, %v2540_v9  ;;  %v359_v24 = vpop.f32.mrb[3].mxu1  ;;  %v445_v25 = vpop.f32.mrb[3].mxu0 }
  0xf2   : > { %v664_v26 = vmax.f32 %v356_v16, 0.0  ;;  %v668_v27 = vmax.f32 %v442_v17, 0.0  ;;  %v360_v28 = vadd.f32 %v359_v24, %v2540_v9  ;;  %v446_v29 = vadd.f32 %v445_v25, %v2540_v9 }
  0xf3   : > { %v695_v30 = vadd.f32 %v667_v21, %v663_v20  ;;  %v679_v31 = vmax.f32 %v358_v22, 0.0  ;;  %v683_v32 = vmax.f32 %v444_v23, 0.0 }
  0xf4   : > { %v696_v33 = vadd.f32 %v668_v27, %v664_v26  ;;  %v680_v34 = vmax.f32 %v360_v28, 0.0  ;;  %v684_v35 = vmax.f32 %v446_v29, 0.0 }
  0xf5   : > { %v699_v36 = vadd.f32 %v683_v32, %v679_v31 }
  0xf6   : > { %v700_v37 = vadd.f32 %v684_v35, %v680_v34  ;;  %v396_v38 = vpop.f32.mrb[4].mxu1  ;;  %v525_v39 = vpop.f32.mrb[4].mxu0 }
  0xf7   : > { %v526_v40 = vadd.f32 %v525_v39, %v2538_v8  ;;  %v398_v41 = vpop.f32.mrb[5].mxu1  ;;  %v527_v42 = vpop.f32.mrb[5].mxu0  ;;  %v397_v52 = vadd.f32 %v396_v38, %v2538_v8 }
  0xf8   : > { %v528_v43 = vadd.f32 %v527_v42, %v2538_v8  ;;  %v400_v44 = vpop.f32.mrb[6].mxu1  ;;  %v529_v45 = vpop.f32.mrb[6].mxu0  ;;  %v399_v54 = vadd.f32 %v398_v41, %v2538_v8 }
  0xf9   : > { %v671_v46 = vmax.f32 %v526_v40, 0.0  ;;  %v530_v47 = vadd.f32 %v529_v45, %v2540_v9  ;;  %v402_v48 = vpop.f32.mrb[7].mxu1  ;;  %v531_v49 = vpop.f32.mrb[7].mxu0  ;;  %v401_v57 = vadd.f32 %v400_v44, %v2540_v9  ;;  %v665_v0 = vmax.f32 %v397_v52, 0.0 }
  0xfa   : > { %v672_v50 = vmax.f32 %v528_v43, 0.0  ;;  %v532_v51 = vadd.f32 %v531_v49, %v2540_v9  ;;  %v403_v58 = vadd.f32 %v402_v48, %v2540_v9  ;;  %v666_v1 = vmax.f32 %v399_v54, 0.0 }
  0xfb   : > { %v703_v53 = vadd.f32 %v695_v30, %v671_v46  ;;  %v687_v55 = vmax.f32 %v530_v47, 0.0  ;;  %v681_v7 = vmax.f32 %v401_v57, 0.0 }
  0xfc   : > { %v704_v56 = vadd.f32 %v696_v33, %v672_v50  ;;  %v688_v59 = vmax.f32 %v532_v51, 0.0  ;;  %v682_v10 = vmax.f32 %v403_v58, 0.0  ;;  %v731_v58 = vld [vmem:[%s2826_s1 + $0x208] sm:$0xf] }
  0xfd   : > { %v707_v60 = vadd.f32 %v699_v36, %v687_v55 }
  0xfe   : > { %v708_v61 = vadd.f32 %v700_v37, %v688_v59  ;;  %v482_v62 = vpop.f32.mrb[8].mxu1  ;;  %v611_v63 = vpop.f32.mrb[8].mxu0 }
  0xff   : > { %v483_v2 = vadd.f32 %v482_v62, %v2538_v8  ;;  %v612_v3 = vadd.f32 %v611_v63, %v2538_v8  ;;  %v484_v5 = vpop.f32.mrb[9].mxu1  ;;  %v613_v6 = vpop.f32.mrb[9].mxu0 }
 0x100   : > { %v485_v11 = vadd.f32 %v484_v5, %v2538_v8  ;;  %v614_v12 = vadd.f32 %v613_v6, %v2538_v8  ;;  %v486_v13 = vpop.f32.mrb[10].mxu1  ;;  %v615_v14 = vpop.f32.mrb[10].mxu0 }
 0x101   : > { %v669_v15 = vmax.f32 %v483_v2, 0.0  ;;  %v675_v16 = vmax.f32 %v612_v3, 0.0  ;;  %v487_v17 = vadd.f32 %v486_v13, %v2540_v9  ;;  %v616_v18 = vadd.f32 %v615_v14, %v2540_v9  ;;  %v488_v19 = vpop.f32.mrb[11].mxu1  ;;  %v617_v20 = vpop.f32.mrb[11].mxu0 }
 0x102   : > { %v670_v21 = vmax.f32 %v485_v11, 0.0  ;;  %v676_v22 = vmax.f32 %v614_v12, 0.0  ;;  %v489_v23 = vadd.f32 %v488_v19, %v2540_v9  ;;  %v618_v24 = vadd.f32 %v617_v20, %v2540_v9 }
 0x103   : > { %v697_v25 = vadd.f32 %v669_v15, %v665_v0  ;;  %v711_v26 = vadd.f32 %v703_v53, %v675_v16  ;;  %v685_v27 = vmax.f32 %v487_v17, 0.0  ;;  %v691_v28 = vmax.f32 %v616_v18, 0.0  ;;  %v2317_v15 = vld [vmem:[%s2826_s1] sm:$0xff]   ;;  %v2318_v17 = vld [vmem:[%s2826_s1 + $0x48] sm:$0xff]  }
 0x104   : > { %v698_v29 = vadd.f32 %v670_v21, %v666_v1  ;;  %v712_v30 = vadd.f32 %v704_v56, %v676_v22  ;;  %v686_v31 = vmax.f32 %v489_v23, 0.0  ;;  %v692_v32 = vmax.f32 %v618_v24, 0.0  ;;  %v2319_v22 = vld [vmem:[%s2826_s1 + $0x8] sm:$0xff]   ;;  %v2320_v24 = vld [vmem:[%s2826_s1 + $0x50] sm:$0xff]  }
 0x105   : > { %v701_v33 = vadd.f32 %v685_v27, %v681_v7  ;;  %v715_v34 = vadd.f32 %v707_v60, %v691_v28  ;;  %v719_v38 = vmul.f32 0.25, %v711_v26  ;;  %v2322_v26 = vld [vmem:[%s2826_s1 + $0x10] sm:$0xff]   ;;  %v2323_v27 = vld [vmem:[%s2826_s1 + $0x58] sm:$0xff]   ;;  %v2326_v28 = vld [vmem:[%s2826_s1 + $0xc0] sm:$0xff]  }
 0x106   : > { %v702_v35 = vadd.f32 %v686_v31, %v682_v10  ;;  %v716_v36 = vadd.f32 %v708_v61, %v692_v32  ;;  %v568_v37 = vpop.f32.mrb[12].mxu1  ;;  %v720_v42 = vmul.f32 0.25, %v712_v30  ;;  %v2315_v61 = vld [vmem:[%s2826_s1 + $0x40] sm:$0xff]  }
 0x107   : > { %v723_v39 = vmul.f32 0.25, %v715_v34  ;;  %v569_v40 = vadd.f32 %v568_v37, %v2538_v8  ;;  %v570_v41 = vpop.f32.mrb[13].mxu1  ;;  %v2325_v30 = vld [vmem:[%s2826_s1 + $0x60] sm:$0xff]   ;;  %v2330_v34 = vld [vmem:[%s2826_s1 + $0xc8] sm:$0xff]   ;;  %v2333_v37 = vld [vmem:[%s2826_s1 + $0x70] sm:$0xff]  }
 0x108   : > { %v724_v43 = vmul.f32 0.25, %v716_v36  ;;  %v571_v44 = vadd.f32 %v570_v41, %v2538_v8  ;;  %v572_v45 = vpop.f32.mrb[14].mxu1  ;;  %v2327_v31 = vld [vmem:[%s2826_s1 + $0x20] sm:$0xff]   ;;  %v2332_v36 = vld [vmem:[%s2826_s1 + $0x88] sm:$0xff]   ;;  %v2337_v41 = vld [vmem:[%s2826_s1 + $0x78] sm:$0xff]  }
 0x109   : > { %v2568_v46 = vpack.c.bf16 %v723_v39, %v719_v38  ;;  %v673_v47 = vmax.f32 %v569_v40, 0.0  ;;  %v573_v48 = vadd.f32 %v572_v45, %v2540_v9  ;;  %v574_v49 = vpop.f32.mrb[15].mxu1  ;;  %v2328_v32 = vld [vmem:[%s2826_s1 + $0x80] sm:$0xff]   ;;  %v2334_v38 = vld [vmem:[%s2826_s1 + $0xd0] sm:$0xff]  }
 0x10a   : > { %v674_v50 = vmax.f32 %v571_v44, 0.0  ;;  %v575_v51 = vadd.f32 %v574_v49, %v2540_v9  ;;  %v728_v52 = vpack.c.bf16 %v724_v43, %v720_v42  ;;  %v2335_v39 = vld [vmem:[%s2826_s1 + $0x30] sm:$0xff]   ;;  %v2339_v42 = vld [vmem:[%s2826_s1 + $0x38] sm:$0xff]   ;;  %v2341_v44 = vld [vmem:[%s2826_s1 + $0xe0] sm:$0xff]  }
 0x10b   : > { %v705_v53 = vadd.f32 %v697_v25, %v673_v47  ;;  %v689_v54 = vmax.f32 %v573_v48, 0.0  ;;  %v2321_v25 = vld [vmem:[%s2826_s1 + $0x214] sm:$0xff]   ;;  %v2349_v45 = vld [vmem:[%s2826_s1 + $0x140] sm:$0xff]   ;;  %v2343_v49 = vld [vmem:[%s2826_s1 + $0xe8] sm:$0xff]  }
 0x10c   : > { %v706_v55 = vadd.f32 %v698_v29, %v674_v50  ;;  %v690_v56 = vmax.f32 %v575_v51, 0.0  ;;  %742 = vmatprep.subr.bf16.mxu0 %v728_v52  ;;  %v2324_v29 = vld [vmem:[%s2826_s1 + $0x18] sm:$0xff]   ;;  %v2336_v40 = vld [vmem:[%s2826_s1 + $0x90] sm:$0xff]   ;;  %v2342_v47 = vld [vmem:[%s2826_s1 + $0xa0] sm:$0xff]  }
 0x10d   : > { %v709_v57 = vadd.f32 %v701_v33, %v689_v54  ;;  %743 = vmatpush1.bf16.msra.mxu0 %v2568_v46  ;;  %v2329_v33 = vld [vmem:[%s2826_s1 + $0x68] sm:$0xff]   ;;  %v2340_v43 = vld [vmem:[%s2826_s1 + $0x98] sm:$0xff]   ;;  %v2350_v48 = vld [vmem:[%s2826_s1 + $0x100] sm:$0xff]  }
 0x10e   : > { %v710_v59 = vadd.f32 %v702_v35, %v690_v56  ;;  %v654_v60 = vpop.f32.mrb[16].mxu1  ;;  %872 = vmatprep.subr.bf16.mxu0 %v728_v52  ;;  %v2331_v35 = vld [vmem:[%s2826_s1 + $0x28] sm:$0xff]   ;;  %v2346_v54 = vld [vmem:[%s2826_s1 + $0xb0] sm:$0xff]   ;;  %v2347_v56 = vld [vmem:[%s2826_s1 + $0xf8] sm:$0xff]  }
 0x10f   : > { %v655_v62 = vadd.f32 %v654_v60, %v2538_v8  ;;  %v656_v63 = vpop.f32.mrb[17].mxu1  ;;  %v2351_v50 = vld [vmem:[%s2826_s1 + $0x148] sm:$0xff]   ;;  %v2357_v60 = vld [vmem:[%s2826_s1 + $0x160] sm:$0xff]  }
 0x110   : > { %v657_v0 = vadd.f32 %v656_v63, %v2538_v8  ;;  %v658_v1 = vpop.f32.mrb[18].mxu1  ;;  %2056 = vmatmul.mubr.msk.bf16.vlgmr.msra.gmra.mrb[12].mxu0 %vm738_vm3, %v731_v58  ;;  %v2316_v8 = vld [vmem:[%s2826_s1 + $0x20c] sm:$0xff]   ;;  %v2360_v63 = vld [vmem:[%s2826_s1 + $0x180] sm:$0xff]  }
 0x111   : > { %v677_v2 = vmax.f32 %v655_v62, 0.0  ;;  %v659_v3 = vadd.f32 %v658_v1, %v2540_v9  ;;  %v660_v5 = vpop.f32.mrb[19].mxu1  ;;  %873 = vmatpush1.bf16.msra.mxu0 %v2568_v46  ;;  %904 = vmatprep.mubr.bf16.mxu0 %v2398_v4  ;;  %v2344_v51 = vld [vmem:[%s2826_s1 + $0xa8] sm:$0xff]   ;;  %v2359_v62 = vld [vmem:[%s2826_s1 + $0x120] sm:$0xff]  }
 0x112   : > { %v678_v6 = vmax.f32 %v657_v0, 0.0  ;;  %v661_v7 = vadd.f32 %v660_v5, %v2540_v9  ;;  %2140 = vmatprep.subr.bf16.mxu0 %v2315_v61  ;;  %v2358_v61 = vld [vmem:[%s2826_s1 + $0x1c0] sm:$0xff]   ;;  %v2361_v0 = vld [vmem:[%s2826_s1 + $0x168] sm:$0xff]   ;;  %v2365_v5 = vld [vmem:[%s2826_s1 + $0x170] sm:$0xff]  }
 0x113   : > { %v713_v10 = vadd.f32 %v705_v53, %v677_v2  ;;  %v693_v11 = vmax.f32 %v659_v3, 0.0  ;;  %v2345_v53 = vld [vmem:[%s2826_s1 + $0xf0] sm:$0xff]   ;;  %v2362_v1 = vld [vmem:[%s2826_s1 + $0x1c8] sm:$0xff]  }
 0x114   : > { %v714_v12 = vadd.f32 %v706_v55, %v678_v6  ;;  %v694_v13 = vmax.f32 %v661_v7, 0.0  ;;  %v2354_v55 = vld [vmem:[%s2826_s1 + $0x110] sm:$0xff]   ;;  %v2363_v2 = vld [vmem:[%s2826_s1 + $0x128] sm:$0xff]  }
 0x115   : > { %v717_v14 = vadd.f32 %v709_v57, %v693_v11  ;;  %v721_v9 = vmul.f32 0.25, %v713_v10  ;;  %v2355_v57 = vld [vmem:[%s2826_s1 + $0x158] sm:$0xff]   ;;  %v2364_v3 = vld [vmem:[%s2826_s1 + $0x188] sm:$0xff]   ;;  %v2366_v6 = vld [vmem:[%s2826_s1 + $0x1d0] sm:$0xff]  }
 0x116   : > { %v718_v16 = vadd.f32 %v710_v59, %v694_v13  ;;  %v722_v19 = vmul.f32 0.25, %v714_v12  ;;  %v2356_v59 = vld [vmem:[%s2826_s1 + $0x118] sm:$0xff]   ;;  %v2367_v7 = vld [vmem:[%s2826_s1 + $0x130] sm:$0xff]  }
 0x117   : > { %v725_v18 = vmul.f32 0.25, %v717_v14  ;;  %v2368_v10 = vld [vmem:[%s2826_s1 + $0x190] sm:$0xff]   ;;  %v2369_v11 = vld [vmem:[%s2826_s1 + $0x178] sm:$0xff]   ;;  %v2373_v14 = vld [vmem:[%s2826_s1 + $0x1e0] sm:$0xff]  }
 0x118   : > { %v726_v20 = vmul.f32 0.25, %v718_v16  ;;  %2060 = vmatmul.mubr.msk.bf16.vlgmr.msra.gmra.mrb[16].mxu0 %vm738_vm3, %v2316_v8  ;;  %v2370_v12 = vld [vmem:[%s2826_s1 + $0x1d8] sm:$0xff]   ;;  %v2375_v16 = vld [vmem:[%s2826_s1 + $0x1e8] sm:$0xff]  }
 0x119   : > { %v2596_v21 = vpack.c.bf16 %v725_v18, %v721_v9  ;;  %2141 = vmatpush3.bf16.msra.mxu0 %v2317_v15  ;;  %914 = vmatprep.mubr.bf16.mxu0 %v2398_v4  ;;  %v2371_v13 = vld [vmem:[%s2826_s1 + $0x138] sm:$0xff]   ;;  %v2374_v15 = vld [vmem:[%s2826_s1 + $0x1a0] sm:$0xff]   ;;  %v2377_v9 = vld [vmem:[%s2826_s1 + $0x1f0] sm:$0xff]  }
 0x11a   : > { %2142 = vmatprep.subr.bf16.mxu0 %v2318_v17  ;;  %v730_v23 = vpack.c.bf16 %v726_v20, %v722_v19  ;;  %v2376_v17 = vld [vmem:[%s2826_s1 + $0x1a8] sm:$0xff]   ;;  %v2378_v18 = vld [vmem:[%s2826_s1 + $0x1b0] sm:$0xff]   ;;  %v2379_v19 = vld [vmem:[%s2826_s1 + $0x1f8] sm:$0xff]  }
 0x11b   : > { %v2380_v20 = vld [vmem:[%s2826_s1 + $0x1b8] sm:$0xff]  }
 0x11c   : > { %783 = vmatprep.subr.bf16.mxu1 %v730_v23 }
 0x11d   : > { %2143 = vmatpush3.bf16.msra.mxu0 %v2319_v22  ;;  %784 = vmatpush1.bf16.msra.mxu1 %v2596_v21  ;;  %v736_v22 = vpop.permute.xlu1 %735 }
 0x11e   : > { %925 = vmatprep.subr.bf16.mxu1 %v730_v23  ;;  %2144 = vmatprep.subr.bf16.mxu0 %v2320_v24 }
 0x120   : > { %2057 = vmatmul.mubr.msk.bf16.vlgmr.msra.gmra.mrb[20].mxu1 %vm738_vm3, %v731_v58  ;;  %2061 = vmatmul.mubr.msk.bf16.gmra.mrb[20].mxu0 %vm738_vm3, %v2321_v25  ;;  %v2348_v58 = vld [vmem:[%s2826_s1 + $0xb8] sm:$0xff]  }
 0x121   : > { %2145 = vmatpush3.bf16.msra.mxu0 %v2322_v26  ;;  %926 = vmatpush1.bf16.msra.mxu1 %v2596_v21 }
 0x122   : > { %1350 = vmatprep.mubr.bf16.mxu0 %v728_v52  ;;  %2146 = vmatprep.subr.bf16.mxu0 %v2323_v27  ;;  %v2352_v52 = vld [vmem:[%s2826_s1 + $0x108] sm:$0xff]  }
 0x123   : > { %957 = vmatprep.mubr.bf16.mxu1 %v2398_v4  ;;  %2168 = vmatprep.subr.bf16.mxu1 %v2326_v28 }
 0x125   : > { %2147 = vmatpush3.bf16.msra.mxu0 %v2324_v29 }
 0x126   : > { %2148 = vmatprep.subr.bf16.mxu0 %v2325_v30 }
 0x128   : > { %2062 = vmatmul.mubr.msk.bf16.vlgmr.msra.gmra.mrb[24].mxu1 %vm738_vm3, %v2316_v8  ;;  %v2372_v8 = vld [vmem:[%s2826_s1 + $0x198] sm:$0xff]  }
 0x129   : > { %2149 = vmatpush3.bf16.msra.mxu0 %v2327_v31  ;;  %2169 = vmatpush3.bf16.msra.mxu1 %v2328_v32 }
 0x12a   : > { %2150 = vmatprep.subr.bf16.mxu0 %v2329_v33  ;;  %2170 = vmatprep.subr.bf16.mxu1 %v2330_v34  ;;  %v839_v33 = vpop.permute.xlu1 %838 }
 0x12b   : > { %967 = vmatprep.mubr.bf16.mxu1 %v2398_v4  ;;  %v2338_v4 = vld [vmem:[%s2826_s1 + $0xd8] sm:$0xff]  }
 0x12d   : > { %2151 = vmatpush3.bf16.msra.mxu0 %v2331_v35  ;;  %2171 = vmatpush3.bf16.msra.mxu1 %v2332_v36  ;;  %v844_v35 = vpop.permute.xlu0 %843 }
 0x12e   : > { %2152 = vmatprep.subr.bf16.mxu0 %v2333_v37  ;;  %2172 = vmatprep.subr.bf16.mxu1 %v2334_v38 }
 0x130   : > { %2063 = vmatmul.mubr.msk.bf16.gmra.mrb[28].mxu1 %vm738_vm3, %v2321_v25 }
 0x131   : > { %2153 = vmatpush3.bf16.msra.mxu0 %v2335_v39  ;;  %2173 = vmatpush3.bf16.msra.mxu1 %v2336_v40 }
 0x132   : > { %1398 = vmatprep.mubr.bf16.mxu1 %v730_v23  ;;  %2154 = vmatprep.subr.bf16.mxu0 %v2337_v41 }
 0x133   : > { %2174 = vmatprep.subr.bf16.mxu1 %v2338_v4 }
 0x135   : > { %2155 = vmatpush3.bf16.msra.mxu0 %v2339_v42  ;;  %2175 = vmatpush3.bf16.msra.mxu1 %v2340_v43 }
 0x136   : > { %2176 = vmatprep.subr.bf16.mxu1 %v2341_v44  ;;  %2196 = vmatprep.subr.bf16.mxu0 %v2349_v45 }
 0x138   : > { %1351 = vmatmul.mubr.bf16.vlgmr.msra.gmra.mrb[24].mxu0 %v2568_v46  ;;  %v2353_v46 = vld [vmem:[%s2826_s1 + $0x150] sm:$0xff]  }
 0x139   : > { %2177 = vmatpush3.bf16.msra.mxu1 %v2342_v47  ;;  %2197 = vmatpush3.bf16.msra.mxu0 %v2350_v48  ;;  %v854_v47 = vpop.permute.xlu0 %853  ;;  %v849_v48 = vpop.permute.xlu1 %848 }
 0x13a   : > { %2178 = vmatprep.subr.bf16.mxu1 %v2343_v49  ;;  %2198 = vmatprep.subr.bf16.mxu0 %v2351_v50 }
 0x13d   : > { %2179 = vmatpush3.bf16.msra.mxu1 %v2344_v51  ;;  %2199 = vmatpush3.bf16.msra.mxu0 %v2352_v52 }
 0x13e   : > { %2180 = vmatprep.subr.bf16.mxu1 %v2345_v53  ;;  %2200 = vmatprep.subr.bf16.mxu0 %v2353_v46 }
 0x141   : > { %2181 = vmatpush3.bf16.msra.mxu1 %v2346_v54  ;;  %2201 = vmatpush3.bf16.msra.mxu0 %v2354_v55 }
 0x142   : > { %2182 = vmatprep.subr.bf16.mxu1 %v2347_v56  ;;  %2202 = vmatprep.subr.bf16.mxu0 %v2355_v57 }
 0x145   : > { %2183 = vmatpush3.bf16.msra.mxu1 %v2348_v58  ;;  %2203 = vmatpush3.bf16.msra.mxu0 %v2356_v59 }
 0x146   : > { %2204 = vmatprep.subr.bf16.mxu0 %v2357_v60  ;;  %2224 = vmatprep.subr.bf16.mxu1 %v2358_v61 }
 0x148   : > { %1399 = vmatmul.mubr.bf16.vlgmr.msra.gmra.mrb[32].mxu1 %v2596_v21  ;;  %v2400_v21 = vmov 0.0  }
 0x149   : > { %2205 = vmatpush3.bf16.msra.mxu0 %v2359_v62  ;;  %2225 = vmatpush3.bf16.msra.mxu1 %v2360_v63 }
 0x14a   : > { %2206 = vmatprep.subr.bf16.mxu0 %v2361_v0  ;;  %2226 = vmatprep.subr.bf16.mxu1 %v2362_v1 }
 0x14d   : > { %2207 = vmatpush3.bf16.msra.mxu0 %v2363_v2  ;;  %2227 = vmatpush3.bf16.msra.mxu1 %v2364_v3 }
 0x14e   : > { %2208 = vmatprep.subr.bf16.mxu0 %v2365_v5  ;;  %2228 = vmatprep.subr.bf16.mxu1 %v2366_v6 }
 0x151   : > { %2209 = vmatpush3.bf16.msra.mxu0 %v2367_v7  ;;  %2229 = vmatpush3.bf16.msra.mxu1 %v2368_v10 }
 0x152   : > { %2210 = vmatprep.subr.bf16.mxu0 %v2369_v11  ;;  %2230 = vmatprep.subr.bf16.mxu1 %v2370_v12 }
 0x155   : > { %2211 = vmatpush3.bf16.msra.mxu0 %v2371_v13  ;;  %2231 = vmatpush3.bf16.msra.mxu1 %v2372_v8 }
 0x156   : > { %2232 = vmatprep.subr.bf16.mxu1 %v2373_v14 }
 0x159   : > { %2233 = vmatpush3.bf16.msra.mxu1 %v2374_v15 }
 0x15a   : > { %2234 = vmatprep.subr.bf16.mxu1 %v2375_v16 }
 0x15d   : > { %2235 = vmatpush3.bf16.msra.mxu1 %v2376_v17 }
 0x15e   : > { %2236 = vmatprep.subr.bf16.mxu1 %v2377_v9 }
 0x161   : > { %2237 = vmatpush3.bf16.msra.mxu1 %v2378_v18 }
 0x162   : > { %2238 = vmatprep.subr.bf16.mxu1 %v2379_v19 }
 0x165   : > { %2239 = vmatpush3.bf16.msra.mxu1 %v2380_v20 }
 0x166   : > { %2273 = vmatprep.subr.bf16.mxu1 %v2400_v21 }
 0x1e3   : > { %v776_v23 = vpop.f32.mrb[12].mxu0 }
 0x1e4   : > { %v777_v24 = vadd.f32 %v776_v23, %v736_v22  ;;  %v778_v25 = vpop.f32.mrb[13].mxu0 }
 0x1e5   : > { %v779_v26 = vadd.f32 %v778_v25, %v736_v22  ;;  %v780_v27 = vpop.f32.mrb[14].mxu0 }
 0x1e6   : > { %v824_v28 = vmax.f32 %v777_v24, 0.0  ;;  %v781_v29 = vpop.f32.mrb[15].mxu0 }
 0x1e7   : > { %v825_v30 = vmax.f32 %v779_v26, 0.0 }
 0x1e8   : > { %v1122_v31 = vpack.c.bf16 %v824_v28, %v824_v28 }
 0x1e9   : > { %v1123_v32 = vpack.c.bf16 %v825_v30, %v825_v30 }
 0x1eb   : > { %v906_v34 = vpop.f32.mrb[16].mxu0  ;;  %1358 = vmatprep.mubr.bf16.mxu0 %v1123_v32 }
 0x1ec   : > { %v907_v36 = vadd.f32 %v906_v34, %v839_v33  ;;  %v908_v37 = vpop.f32.mrb[17].mxu0  ;;  %1359 = vmatmul.mubr.bf16.gmra.mrb[28].mxu0 %v1122_v31 }
 0x1ed   : > { %v909_v38 = vadd.f32 %v908_v37, %v839_v33  ;;  %v910_v39 = vpop.f32.mrb[18].mxu0 }
 0x1ee   : > { %v978_v40 = vmax.f32 %v907_v36, 0.0  ;;  %v911_v41 = vadd.f32 %v910_v39, %v844_v35  ;;  %v912_v4 = vpop.f32.mrb[19].mxu0 }
 0x1ef   : > { %v979_v42 = vmax.f32 %v909_v38, 0.0  ;;  %v913_v43 = vadd.f32 %v912_v4, %v844_v35 }
 0x1f0   : > { %v982_v44 = vmax.f32 %v911_v41, 0.0 }
 0x1f1   : > { %v983_v45 = vmax.f32 %v913_v43, 0.0 }
 0x1f2   : > { %v1414_v49 = vpack.c.bf16 %v982_v44, %v978_v40 }
 0x1f3   : > { %v1415_v50 = vpack.c.bf16 %v983_v45, %v979_v42  ;;  %v817_v51 = vpop.f32.mrb[20].mxu1  ;;  %v916_v52 = vpop.f32.mrb[20].mxu0 }
 0x1f4   : > { %v818_v53 = vadd.f32 %v817_v51, %v736_v22  ;;  %v917_v46 = vadd.f32 %v916_v52, %v849_v48  ;;  %v819_v54 = vpop.f32.mrb[21].mxu1  ;;  %v918_v55 = vpop.f32.mrb[21].mxu0 }
 0x1f5   : > { %v820_v56 = vadd.f32 %v819_v54, %v736_v22  ;;  %v919_v57 = vadd.f32 %v918_v55, %v849_v48  ;;  %v821_v58 = vpop.f32.mrb[22].mxu1  ;;  %v920_v59 = vpop.f32.mrb[22].mxu0  ;;  %1646 = vmatprep.mubr.bf16.mxu0 %v1415_v50  ;;  %v2381_v54 = vld [vmem:[%s2826_s1 + $0x22c] sm:$0xff]   ;;  %v2382_v55 = vld [vmem:[%s2826_s1 + $0x21c] sm:$0xff]  }
 0x1f6   : > { %v826_v60 = vmax.f32 %v818_v53, 0.0  ;;  %v986_v61 = vmax.f32 %v917_v46, 0.0  ;;  %v921_v62 = vadd.f32 %v920_v59, %v854_v47  ;;  %v822_v63 = vpop.f32.mrb[23].mxu1  ;;  %v922_v0 = vpop.f32.mrb[23].mxu0  ;;  %1647 = vmatmul.mubr.bf16.vlgmr.msra.gmra.mrb[32].mxu0 %v1414_v49 }
 0x1f7   : > { %v827_v1 = vmax.f32 %v820_v56, 0.0  ;;  %v987_v2 = vmax.f32 %v919_v57, 0.0  ;;  %v923_v3 = vadd.f32 %v922_v0, %v854_v47 }
 0x1f8   : > { %v990_v5 = vmax.f32 %v921_v62, 0.0  ;;  %v1124_v10 = vpack.c.bf16 %v826_v60, %v826_v60 }
 0x1f9   : > { %v1125_v6 = vpack.c.bf16 %v827_v1, %v827_v1  ;;  %v991_v7 = vmax.f32 %v923_v3, 0.0 }
 0x1fa   : > { %v1418_v11 = vpack.c.bf16 %v990_v5, %v986_v61 }
 0x1fb   : > { %v1419_v12 = vpack.c.bf16 %v991_v7, %v987_v2  ;;  %v959_v13 = vpop.f32.mrb[24].mxu1  ;;  %1406 = vmatprep.mubr.bf16.mxu1 %v1125_v6 }
 0x1fc   : > { %v960_v8 = vadd.f32 %v959_v13, %v839_v33  ;;  %v961_v14 = vpop.f32.mrb[25].mxu1  ;;  %1407 = vmatmul.mubr.bf16.gmra.mrb[36].mxu1 %v1124_v10 }
 0x1fd   : > { %v962_v15 = vadd.f32 %v961_v14, %v839_v33  ;;  %v963_v16 = vpop.f32.mrb[26].mxu1  ;;  %1654 = vmatprep.mubr.bf16.mxu0 %v1419_v12 }
 0x1fe   : > { %v964_v17 = vadd.f32 %v963_v16, %v844_v35  ;;  %v965_v9 = vpop.f32.mrb[27].mxu1  ;;  %1655 = vmatmul.mubr.bf16.gmra.mrb[36].mxu0 %v1418_v11  ;;  %v980_v19 = vmax.f32 %v960_v8, 0.0 }
 0x1ff   : > { %v966_v18 = vadd.f32 %v965_v9, %v844_v35  ;;  %v981_v22 = vmax.f32 %v962_v15, 0.0  ;;  %2269 = vmatprep.mubr.msk.bf16.mxu0 %vm1753_vm5, %v2382_v55 }
 0x200   : > { %v984_v20 = vmax.f32 %v964_v17, 0.0 }
 0x201   : > { %v985_v23 = vmax.f32 %v966_v18, 0.0 }
 0x202   : > { %v1416_v24 = vpack.c.bf16 %v984_v20, %v980_v19 }
 0x203   : > { %v1417_v25 = vpack.c.bf16 %v985_v23, %v981_v22  ;;  %v969_v26 = vpop.f32.mrb[28].mxu1 }
 0x204   : > { %v970_v27 = vadd.f32 %v969_v26, %v849_v48  ;;  %v971_v28 = vpop.f32.mrb[29].mxu1 }
 0x205   : > { %v972_v29 = vadd.f32 %v971_v28, %v849_v48  ;;  %v973_v30 = vpop.f32.mrb[30].mxu1  ;;  %1695 = vmatprep.mubr.bf16.mxu1 %v1417_v25 }
 0x206   : > { %v974_v31 = vadd.f32 %v973_v30, %v854_v47  ;;  %v975_v32 = vpop.f32.mrb[31].mxu1  ;;  %1696 = vmatmul.mubr.bf16.vlgmr.msra.gmra.mrb[40].mxu1 %v1416_v24  ;;  %v988_v34 = vmax.f32 %v970_v27, 0.0 }
 0x207   : > { %v976_v33 = vadd.f32 %v975_v32, %v854_v47  ;;  %v989_v37 = vmax.f32 %v972_v29, 0.0 }
 0x208   : > { %v992_v36 = vmax.f32 %v974_v31, 0.0 }
 0x209   : > { %v993_v35 = vmax.f32 %v976_v33, 0.0 }
 0x20a   : > { %v1420_v38 = vpack.c.bf16 %v992_v36, %v988_v34 }
 0x20b   : > { %v1421_v39 = vpack.c.bf16 %v993_v35, %v989_v37  ;;  %v2156_v40 = vpop.f32.mrb[24].mxu0  ;;  %v1726_v37 = vpop.permute.xlu1 %1725 }
 0x20c   : > { %v2157_v41 = vpop.f32.mrb[25].mxu0 }
 0x20d   : > { %v2158_v4 = vadd.f32 %v2157_v41, %v2156_v40  ;;  %v2159_v42 = vpop.f32.mrb[26].mxu0  ;;  %1703 = vmatprep.mubr.bf16.mxu1 %v1421_v39  ;;  %v1731_v39 = vpop.permute.xlu0 %1730 }
 0x20e   : > { %v2160_v43 = vpop.f32.mrb[27].mxu0  ;;  %1704 = vmatmul.mubr.bf16.gmra.mrb[44].mxu1 %v1420_v38  ;;  %v2383_v38 = vld [vmem:[%s2826_s1 + $0x224] sm:$0xff]  }
 0x20f   : > { %v2161_v44 = vadd.f32 %v2160_v43, %v2159_v42  ;;  %2275 = vmatprep.mubr.msk.bf16.mxu1 %vm2401_vm4, %v2400_v21  ;;  %v1736_v40 = vpop.permute.xlu1 %1735 }
 0x211   : > { %v1741_v41 = vpop.permute.xlu0 %1740 }
 0x21b   : > { %v2184_v45 = vpop.f32.mrb[32].mxu1 }
 0x21c   : > { %v2185_v47 = vpop.f32.mrb[33].mxu1 }
 0x21d   : > { %v2186_v48 = vadd.f32 %v2185_v47, %v2184_v45  ;;  %v2187_v49 = vpop.f32.mrb[34].mxu1  ;;  %v1830_v45 = vpop.permute.xlu0 %1829 }
 0x21e   : > { %v2188_v50 = vpop.f32.mrb[35].mxu1 }
 0x21f   : > { %v1401_v51 = vadd.f32 %v2186_v48, %v2158_v4  ;;  %v2189_v52 = vadd.f32 %v2188_v50, %v2187_v49  ;;  %v1825_v4 = vpop.permute.xlu1 %1824 }
 0x221   : > { %v1404_v53 = vadd.f32 %v2189_v52, %v2161_v44 }
 0x223   : > { %v1819_v46 = vpack.c.bf16 %v1404_v53, %v1401_v51 }
 0x225   : > { %2274 = vmatpush3.bf16.msra.mxu1 %v1819_v46 }
 0x228   : > { %2276 = vmatmul.mubr.msk.bf16.vlgmr.msra.gmra.mrb[48].mxu1 %vm738_vm3, %v2381_v54 }
 0x2bf   : > { %v2162_v56 = vpop.f32.mrb[28].mxu0 }
 0x2c0   : > { %v2163_v57 = vpop.f32.mrb[29].mxu0 }
 0x2c1   : > { %v2164_v58 = vadd.f32 %v2163_v57, %v2162_v56  ;;  %v2165_v59 = vpop.f32.mrb[30].mxu0 }
 0x2c2   : > { %v2166_v60 = vpop.f32.mrb[31].mxu0 }
 0x2c9   : > { %v2212_v61 = vpop.f32.mrb[32].mxu0 }
 0x2ca   : > { %v2213_v62 = vpop.f32.mrb[33].mxu0 }
 0x2cb   : > { %v2214_v63 = vadd.f32 %v2213_v62, %v2212_v61  ;;  %v2215_v0 = vpop.f32.mrb[34].mxu0 }
 0x2cc   : > { %v2216_v1 = vpop.f32.mrb[35].mxu0 }
 0x2cd   : > { %v2217_v2 = vadd.f32 %v2216_v1, %v2215_v0 }
 0x2cf   : > { %v2190_v3 = vpop.f32.mrb[36].mxu1 }
 0x2d0   : > { %v2191_v5 = vpop.f32.mrb[37].mxu1 }
 0x2d1   : > { %v2192_v6 = vadd.f32 %v2191_v5, %v2190_v3  ;;  %v2193_v7 = vpop.f32.mrb[38].mxu1  ;;  %v2218_v10 = vpop.f32.mrb[36].mxu0 }
 0x2d2   : > { %v2194_v11 = vpop.f32.mrb[39].mxu1  ;;  %v2219_v12 = vpop.f32.mrb[37].mxu0 }
 0x2d3   : > { %v1409_v13 = vadd.f32 %v2192_v6, %v2164_v58  ;;  %v2220_v8 = vadd.f32 %v2219_v12, %v2218_v10  ;;  %v2221_v14 = vpop.f32.mrb[38].mxu0  ;;  %v1893_v3 = vpop.permute.xlu1 %1892 }
 0x2d4   : > { %v2222_v15 = vpop.f32.mrb[39].mxu0  ;;  %v1898_v11 = vpop.permute.xlu0 %1897 }
 0x2d5   : > { %v2223_v16 = vadd.f32 %v2222_v15, %v2221_v14  ;;  %v1714_v36 = vpack.c.bf16 %v1409_v13, %v1409_v13 }
 0x2d7   : > { %v1762_v35 = vsel %vm1760_vm6, %v1714_v36, 0  ;;  %v2307_v5 = vpop.permute.xlu1 %2306 }
 0x2d8   : > { %v2308_v13 = vunpack.i.l.bf16 %v2307_v5 }
 0x2d9   : > { %v2240_v17 = vpop.f32.mrb[40].mxu1 }
 0x2da   : > { %v2241_v9 = vpop.f32.mrb[41].mxu1 }
 0x2db   : > { %v2242_v18 = vadd.f32 %v2241_v9, %v2240_v17  ;;  %v2243_v19 = vpop.f32.mrb[42].mxu1 }
 0x2dc   : > { %v2244_v20 = vpop.f32.mrb[43].mxu1 }
 0x2dd   : > { %v1698_v22 = vadd.f32 %v2242_v18, %v2214_v63  ;;  %v2245_v23 = vadd.f32 %v2244_v20, %v2243_v19 }
 0x2df   : > { %v1701_v24 = vadd.f32 %v2245_v23, %v2217_v2  ;;  %v2384_v2 = vld [vmem:[%s2826_s1 + $0x234] sm:$0xff]  }
 0x2e1   : > { %v2246_v25 = vpop.f32.mrb[44].mxu1  ;;  %v1712_v26 = vpack.c.bf16 %v1701_v24, %v1698_v22 }
 0x2e2   : > { %v2247_v27 = vpop.f32.mrb[45].mxu1 }
 0x2e3   : > { %v2248_v28 = vadd.f32 %v2247_v27, %v2246_v25  ;;  %v2249_v29 = vpop.f32.mrb[46].mxu1  ;;  %2263 = vmatprep.subr.bf16.mxu0 %v1712_v26 }
 0x2e4   : > { %v2250_v30 = vpop.f32.mrb[47].mxu1  ;;  %2264 = vmatpush3.bf16.msra.mxu0 %v1712_v26 }
 0x2e5   : > { %v1706_v31 = vadd.f32 %v2248_v28, %v2220_v8  ;;  %v2251_v32 = vadd.f32 %v2250_v30, %v2249_v29  ;;  %v1982_v28 = vpop.permute.xlu0 %1981 }
 0x2e7   : > { %v1709_v33 = vadd.f32 %v2251_v32, %v2223_v16  ;;  %v2309_v16 = vunpack.i.h.bf16 %v2307_v5 }
 0x2e9   : > { %v1713_v34 = vpack.c.bf16 %v1709_v33, %v1706_v31 }
 0x2eb   : > { %2265 = vmatprep.subr.bf16.mxu0 %v1713_v34 }
 0x2ec   : > { %2266 = vmatpush3.bf16.msra.mxu0 %v1713_v34 }
 0x2ed   : > { %2289 = vmatprep.subr.msk.bf16.mxu0 %vm1760_vm6, %v1714_v36 }
 0x2f0   : > { %2268 = vmatpush3.bf16.msra.mxu0 %v1762_v35 }
 0x2f1   : > { %2279 = vmatprep.subr.bf16.mxu0 %v2400_v21 }
 0x2f3   : > { %2270 = vmatmul.mubr.msk.bf16.vlgmr.msra.gmra.mrb[40].mxu0 %vm1753_vm5, %v2383_v38 }
 0x2f4   : > { %2285 = vmatprep.mubr.msk.bf16.mxu0 %vm2401_vm4, %v2400_v21 }
 0x2fb   : > { %v1874_v42 = vpop.f32.mrb[48].mxu1 }
 0x2fc   : > { %v1875_v43 = vadd.f32 %v1874_v42, %v1825_v4  ;;  %v2277_v44 = vpop.f32.mrb[49].mxu1 }
 0x2fd   : > { %v1877_v47 = vpop.f32.mrb[50].mxu1 }
 0x2fe   : > { %v1878_v48 = vadd.f32 %v1877_v47, %v1830_v45  ;;  %v2278_v49 = vpop.f32.mrb[51].mxu1  ;;  %v1881_v50 = vmax.f32 %v1875_v43, 0.0 }
 0x300   : > { %v1882_v51 = vmax.f32 %v1878_v48, 0.0 }
 0x302   : > { %v1885_v52 = vpack.c.bf16 %v1882_v51, %v1881_v50 }
 0x3c6   : > { %v2271_v53 = vpop.f32.mrb[40].mxu0 }
 0x3c7   : > { %v1807_v46 = vadd.f32 %v2271_v53, %v1736_v40  ;;  %v1798_v54 = vpop.f32.mrb[41].mxu0 }
 0x3c8   : > { %v1799_v55 = vadd.f32 %v1798_v54, %v1726_v37  ;;  %v2272_v56 = vpop.f32.mrb[42].mxu0 }
 0x3c9   : > { %v1810_v57 = vadd.f32 %v2272_v56, %v1741_v41  ;;  %v1801_v58 = vpop.f32.mrb[43].mxu0  ;;  %v1815_v60 = vmax.f32 %v1807_v46, 0.0 }
 0x3ca   : > { %v1802_v59 = vadd.f32 %v1801_v58, %v1731_v39  ;;  %v1813_v62 = vmax.f32 %v1799_v55, 0.0 }
 0x3cb   : > { %v1816_v61 = vmax.f32 %v1810_v57, 0.0 }
 0x3cc   : > { %v1814_v63 = vmax.f32 %v1802_v59, 0.0 }
 0x3cd   : > { %v1884_v0 = vpack.c.bf16 %v1816_v61, %v1815_v60 }
 0x3ce   : > { %v1883_v1 = vpack.c.bf16 %v1814_v63, %v1813_v62 }
 0x3d0   : > { %2280 = vmatpush3.bf16.msra.mxu0 %v1883_v1 }
 0x3d1   : > { %2281 = vmatprep.subr.bf16.mxu0 %v2400_v21 }
 0x3d4   : > { %2282 = vmatpush3.bf16.msra.mxu0 %v1884_v0 }
 0x3d5   : > { %2283 = vmatprep.subr.bf16.mxu0 %v2400_v21 }
 0x3d8   : > { %2284 = vmatpush3.bf16.msra.mxu0 %v1885_v52 }
 0x3db   : > { %2286 = vmatmul.mubr.msk.bf16.vlgmr.msra.gmra.mrb[44].mxu0 %vm1905_vm7, %v2384_v2 }
 0x4ae   : > { %v1943_v6 = vpop.f32.mrb[44].mxu0 }
 0x4af   : > { %v1944_v7 = vadd.f32 %v1943_v6, %v1893_v3  ;;  %v2287_v10 = vpop.f32.mrb[45].mxu0 }
 0x4b0   : > { %v1946_v12 = vpop.f32.mrb[46].mxu0 }
 0x4b1   : > { %v1950_v8 = vmax.f32 %v1944_v7, 0.0  ;;  %v1947_v14 = vadd.f32 %v1946_v12, %v1898_v11  ;;  %v2288_v15 = vpop.f32.mrb[47].mxu0 }
 0x4b3   : > { %v1966_v21 = vmul.f32 %v2308_v13, %v1950_v8  ;;  %v1951_v17 = vmax.f32 %v1947_v14, 0.0 }
 0x4b5   : > { %v1967_v9 = vmul.f32 %v2309_v16, %v1951_v17  ;;  %v1969_v18 = vsel %vm1968_vm8, %v1966_v21, 0.0 }
 0x4b7   : > { %v1970_v19 = vsel %vm1968_vm8, %v1967_v9, 0.0 }
 0x4b8   : > { %v1971_v20 = vadd.f32 %v1970_v19, %v1969_v18 }
 0x4ba   : > { %v1972_v22 = vrot.slane %v1971_v20, 4 }
 0x4bc   : > { %v1973_v23 = vadd.f32 %v1972_v22, %v1971_v20 }
 0x4be   : > { %v1974_v24 = vrot.slane %v1973_v23, 2 }
 0x4c0   : > { %v1975_v25 = vadd.f32 %v1974_v24, %v1973_v23 }
 0x4c2   : > { %v1976_v26 = vrot.slane %v1975_v25, 1 }
 0x4c4   : > { %v1977_v27 = vadd.f32 %v1976_v26, %v1975_v25 }
 0x4c6   : > { %v1984_v29 = vadd.f32 %v1982_v28, %v1977_v27 }
 0x4c8   : > { %v2136_v30 = vmul.f32 -1.442695, %v1984_v29 }
 0x4ca   : > { %2385 = vpow2.f32 %v2136_v30 }
 0x4d4   : > { %v2386_v31 = vpop.eup %2385 }
 0x4d5   : > { %v1988_v32 = vadd.f32 1.0, %v2386_v31 }
 0x4d7   : > { %2387 = vrcp.f32 %v1988_v32 }
 0x4e1   : > { %v2388_v33 = vpop.eup %2387 }
 0x4e2   : > { %1992 = vst.msk [vmem:[%s166_s23] sm:$0x1] %vm1991_vm9, %v2388_v33 }
 0x4e3 PF: > { %s13_s12 = sadd.s32 1, %s2395_s12  }
 0x4e4   : > { %p10_p4 = scmp.ge.s32.totalorder %s13_s12, 4  }
 0x4e6   :  { %12 = sbr.rel (!%p10_p4) target bundleno = 1 (0x1), region = 62 }

</bundles_post_ra>
